<compile_context>
chip_gen: v6e
topology: v6e:2x2x1
jax: 0.10.0
libtpu: 0.0.40
codegen_flags: <defaults>
</compile_context>

<pallas_src>
import jax
import jax.numpy as jnp
from jax.experimental import pallas as pl
from jax.experimental.pallas import tpu as pltpu


def _swish_kernel(x_ref, o_ref):
    # Explicit f32 compute (free: kernel is HBM-bound) — matches PyTorch's
    # opmath for half dtypes and avoids relying on implicit widening on v5e.
    x = x_ref[...].astype(jnp.float32)
    # silu(x) = x * sigmoid(x) == 0.5 * x * (1 + tanh(0.5 * x)).
    # tanh form: a single EUP op per element (vs exp + divide), keeping the
    # kernel memory-bound even for bf16 at v7x HBM rates.
    y = 0.5 * x * (1.0 + jnp.tanh(0.5 * x))
    o_ref[...] = y.astype(o_ref.dtype)


def _swish_xla(x):
    """Plain-XLA swish for tiny tensors / sub-128 tails."""
    xf = x.astype(jnp.float32)
    return (0.5 * xf * (1.0 + jnp.tanh(0.5 * xf))).astype(x.dtype)


def _vmem_budget():
    """(vmem_limit_bytes, target_block_bytes) sized from the local chip."""
    cap = 64 * 1024 * 1024  # conservative default = v7x physical VMEM
    try:
        info = pltpu.get_tpu_info()
        cap = int(getattr(info, "vmem_capacity_bytes", cap) or cap)
    except Exception:
        pass
    # Leave ~1/4 of physical VMEM as compiler headroom; never ask for > 64 MiB.
    limit = min(cap * 3 // 4, 64 * 1024 * 1024)
    # in + out, each double-buffered -> 4 live block buffers (+ slack).
    block = limit // 6
    return limit, block


def _round_up(v, m):
    return (v + m - 1) // m * m


def swish(x, *, donate_input=False, min_pallas_elems=64 * 1024):
    """Elementwise swish; matches PyTorch Swish.forward (x * x.sigmoid())."""
    orig_shape = x.shape
    dtype = x.dtype
    n = x.size
    if n == 0:
        return x
    itemsize = jnp.dtype(dtype).itemsize

    # Tiny tensors: kernel launch + pipeline prologue costs more than the op.
    if n < min_pallas_elems:
        return _swish_xla(x)

    vmem_limit, target_block_bytes = _vmem_budget()
    sublane = {4: 8, 2: 16, 1: 32}.get(itemsize, 8)

    # Lane-dense columns: widest power-of-two multiple of 128 that divides n.
    cols = 128
    for c in (4096, 2048, 1024, 512, 256):
        if n % c == 0:
            cols = c
            break
    n_main = (n // cols) * cols          # == n whenever n % 128 == 0
    tail = n - n_main

    flat = x.reshape(-1)                 # free (bitcast) for contiguous x
    if n_main == 0:                      # n < 128: nothing left for the kernel
        return _swish_xla(x)

    main = flat if tail == 0 else flat[:n_main]
    rows = n_main // cols
    x2 = main.reshape(rows, cols)        # free when tail == 0

    # Block sizing: ~target_block_bytes per block, rounded to the packed-sublane
    # multiple, capped so the grid has >= 4 "parallel" steps (v7x: 2 TensorCores).
    target_rows = max(
        sublane, (target_block_bytes // (cols * itemsize)) // sublane * sublane)
    quarter_rows = _round_up(pl.cdiv(rows, 4), sublane)
    block_rows = min(target_rows, quarter_rows)
    if block_rows >= rows:
        block_rows = rows                # single full-extent block
    grid = (pl.cdiv(rows, block_rows),)  # ragged last block: OOB writes masked

    n_kernel = rows * cols
    extra = {"input_output_aliases": {0: 0}} if donate_input else {}
    out = pl.pallas_call(
        _swish_kernel,
        out_shape=jax.ShapeDtypeStruct((rows, cols), dtype),
        grid=grid,
        in_specs=[pl.BlockSpec((block_rows, cols), lambda i: (i, 0))],
        out_specs=pl.BlockSpec((block_rows, cols), lambda i: (i, 0)),
        compiler_params=pltpu.CompilerParams(
            dimension_semantics=("parallel",),
            vmem_limit_bytes=vmem_limit,
        ),
        cost_estimate=pl.CostEstimate(
            flops=3 * n_kernel,
            transcendentals=n_kernel,
            bytes_accessed=2 * n_kernel * itemsize,
        ),
        **extra,
    )(x2)

    y = out.reshape(-1)
    if tail:
        # TODO(synk): the <128-element tail costs one slice+concat pass; real NN
        # activation shapes are 128-divisible and never take this branch.
        y = jnp.concatenate([y, _swish_xla(flat[n_main:])])
    return y.reshape(orig_shape)


if __name__ == "__main__":
    key = jax.random.PRNGKey(0)
    k1, k2, k3, k4 = jax.random.split(key, 4)

    # 1) Module-spec shape (NCHW: batch=2, channels=4, 16x16), default path.
    x = jax.random.normal(k1, (2, 4, 16, 16), dtype=jnp.float32)
    y = swish(x)
    jax.block_until_ready(y)
    ref = x * jax.nn.sigmoid(x)
    assert y.shape == x.shape and y.dtype == x.dtype
    assert jnp.allclose(y, ref, atol=1e-5, rtol=1e-5)

    # 2) Same small tensor forced through the Pallas kernel.
    y_k = swish(x, min_pallas_elems=0)
    jax.block_until_ready(y_k)
    assert jnp.allclose(y_k, ref, atol=1e-5, rtol=1e-5)

    # 3) Multi-block pipelined path (128-divisible, zero wrapper copies, grid=4).
    x_big = jax.random.normal(k2, (4, 64, 32, 32), dtype=jnp.float32)
    y_big = swish(x_big, min_pallas_elems=0)
    jax.block_until_ready(y_big)
    assert jnp.allclose(y_big, x_big * jax.nn.sigmoid(x_big), atol=1e-5, rtol=1e-5)

    # 4) Non-128-divisible shape: ragged last block + <128-element tail path.
    x_odd = jax.random.normal(k3, (3, 5, 7, 11, 13), dtype=jnp.float32)
    y_odd = swish(x_odd, min_pallas_elems=0)
    jax.block_until_ready(y_odd)
    assert y_odd.shape == x_odd.shape
    assert jnp.allclose(y_odd, x_odd * jax.nn.sigmoid(x_odd), atol=1e-5, rtol=1e-5)

    # 5) bf16: explicit f32 opmath in-kernel, packed-sublane-aware tiling.
    x_bf = jax.random.normal(k4, (2, 4, 32, 32), dtype=jnp.bfloat16)
    y_bf = swish(x_bf, min_pallas_elems=0)
    jax.block_until_ready(y_bf)
    xf = x_bf.astype(jnp.float32)
    assert y_bf.dtype == jnp.bfloat16 and y_bf.shape == x_bf.shape
    assert jnp.allclose(y_bf.astype(jnp.float32), xf * jax.nn.sigmoid(xf),
                        atol=2e-2, rtol=2e-2)

    print("KERNEL_OK")
</pallas_src>

<mosaic_0001>
module attributes {stable_mosaic.version = 11 : i64} {
  func.func @_swish_kernel(%arg0: i32, %arg1: memref<1x2048xf32, #tpu.memory_space<vmem>>, %arg2: memref<1x2048xf32, #tpu.memory_space<vmem>>) attributes {dimension_semantics = [#tpu.dimension_semantics<parallel>], iteration_bounds = array<i64: 1>, scalar_prefetch = 0 : i64, scratch_operands = 0 : i64, tpu.core_type = #tpu.core_type<tc>, window_params = [{transform_indices = @transform_0, window_bounds = array<i64: 1, 2048>}, {transform_indices = @transform_1, window_bounds = array<i64: 1, 2048>}]} {
    %c0 = arith.constant 0 : index
    %c0_0 = arith.constant 0 : index
    %0 = vector.load %arg1[%c0, %c0_0] : memref<1x2048xf32, #tpu.memory_space<vmem>>, vector<1x2048xf32>
    %cst = arith.constant 5.000000e-01 : f32
    %1 = vector.broadcast %cst : f32 to vector<1x2048xf32>
    %2 = arith.mulf %1, %0 : vector<1x2048xf32>
    %cst_1 = arith.constant 5.000000e-01 : f32
    %3 = vector.broadcast %cst_1 : f32 to vector<1x2048xf32>
    %4 = arith.mulf %3, %0 : vector<1x2048xf32>
    %5 = math.tanh %4 : vector<1x2048xf32>
    %cst_2 = arith.constant 1.000000e+00 : f32
    %6 = vector.broadcast %cst_2 : f32 to vector<1x2048xf32>
    %7 = arith.addf %6, %5 : vector<1x2048xf32>
    %8 = arith.mulf %2, %7 : vector<1x2048xf32>
    %c0_3 = arith.constant 0 : index
    %c0_4 = arith.constant 0 : index
    %9 = vector.load %arg2[%c0_3, %c0_4] : memref<1x2048xf32, #tpu.memory_space<vmem>>, vector<1x2048xf32>
    tpu.vector_store %arg2[%c0_3, %c0_4], %8 {strides = array<i32>} : memref<1x2048xf32, #tpu.memory_space<vmem>>, vector<1x2048xf32>,
    return
  }
  func.func @transform_0(%arg0: i32) -> (i32, i32) {
    %c0_i32 = arith.constant 0 : i32
    %c0_i32_0 = arith.constant 0 : i32
    return %arg0, %c0_i32 : i32, i32
  }
  func.func @transform_1(%arg0: i32) -> (i32, i32) {
    %c0_i32 = arith.constant 0 : i32
    %c0_i32_0 = arith.constant 0 : i32
    return %arg0, %c0_i32 : i32, i32
  }
}

</mosaic_0001>

<bundles_post_ra>
// kernel: tpu_custom_call.1
= control target key start
LH: loop header
LB: loop body
LE: loop exit
PB: predicated region body
PF: predicated region fallthrough
CT: control target
= control target key end

     0   :  { %6 = vsyncpa [#allocation3], 0  ;;  %s116_s0 = inlined_call_operand.hbm [shape: f32[1,2048], index: 0, kind: input, shape index: {}]   ;;  %s117_s1 = inlined_call_operand.hbm [shape: f32[1,2048], index: 1, kind: output, shape index: {}]  }
   0x1   :  { %7 = vsyncpa [#allocation4], 0  ;;  %s98_s6 = smov [#allocation2]  }
   0x2   :  { %s14_s7 = sshll.u32 %s98_s6, 4  ;;  %s15_s7 = int_to_ptr.vmem [resolvable:$true] %s14_s7 }
   0x3   :  { %s62_s8 = scalar_lea.vmem %s15_s7, 256  ;;  %p67_p1 = scmp.lt.s32.totalorder %s15_s7, %s15_s7 }
   0x4   :  { %p63_p0 = scmp.ne.s32.totalorder %s15_s7, %s62_s8  ;;  %p68_p2 = scmp.lt.s32.totalorder %s62_s8, %s62_s8 }
   0x6   :  { %p69_p3 = por %p68_p2, %p67_p1 }
   0x8   :  { %p70_p4 = pnand %p69_p3, %p63_p0 }
   0xa   :  { %73 = shalt.err (!%p70_p4)
}
   0xb   :  { %17 = dma.hbm_to_vmem [thread:$0]  %s116_s0, 256, %s15_s7, [#allocation3]  }
   0xc   :  { %94 = dma.done.wait [#allocation3], 256  }
   0xd   :  { %95 = vsyncadd [#allocation3], 4294967040  ;;  %v21_v0 = vld [vmem:[#allocation2] sm:$0xff]  ;;  %v22_v1 = vld [vmem:[#allocation2 + $0x8] sm:$0xff]  ;;  %s99_s11 = smov [#allocation5]  }
   0xe   :  { %v23_v2 = vmul.f32 0.5, %v21_v0  ;;  %v24_v3 = vmul.f32 0.5, %v22_v1  ;;  %s39_s12 = sshll.u32 %s99_s11, 4  ;;  %s40_s12 = int_to_ptr.vmem [resolvable:$true] %s39_s12 }
   0xf   :  { %s74_s0 = scalar_lea.vmem %s40_s12, 256  ;;  %p79_p6 = scmp.lt.s32.totalorder %s40_s12, %s40_s12 }
  0x10   :  { %50 = vtanh.f32 %v23_v2  ;;  %p75_p5 = scmp.ne.s32.totalorder %s40_s12, %s74_s0  ;;  %p80_p7 = scmp.lt.s32.totalorder %s74_s0, %s74_s0 }
  0x11   :  { %52 = vtanh.f32 %v24_v3 }
  0x12   :  { %p81_p8 = por %p80_p7, %p79_p6 }
  0x14   :  { %p82_p9 = pnand %p81_p8, %p75_p5 }
  0x1d   :  { %v51_v4 = vpop.eup %50 }
  0x1e   :  { %v53_v5 = vpop.eup %52  ;;  %v27_v6 = vadd.f32 1.0, %v51_v4 }
  0x1f   :  { %v28_v7 = vadd.f32 1.0, %v53_v5 }
  0x20   :  { %v29_v8 = vmul.f32 %v27_v6, %v23_v2 }
  0x21   :  { %v30_v9 = vmul.f32 %v28_v7, %v24_v3 }
  0x22   :  { %31 = vst [vmem:[#allocation5] sm:$0xff] %v29_v8 }
  0x23   :  { %32 = vst [vmem:[#allocation5 + $0x8] sm:$0xff] %v30_v9 }
  0x24   :  { %85 = shalt.err (!%p82_p9)
}
  0x25   :  { %42 = dma.vmem_to_hbm [thread:$0]  %s40_s12, 256, %s117_s1, [#allocation4]  }
  0x26   :  { %96 = dma.done.wait [#allocation4], 256  }
  0x27   :  { %97 = vsyncadd [#allocation4], 4294967040 }
  0x28   :  { %46 = vsyncpa [#allocation3], 1 }
  0x29   :  { %47 = vsyncpa [#allocation4], 1 }

</bundles_post_ra>
